<compile_context>
chip_gen: v7x
topology: tpu7x:2x2x1
jax: 0.10.0
libtpu: 0.0.40
codegen_flags: <defaults>
</compile_context>

<pallas_src>
import functools
import math

import jax
import jax.numpy as jnp
import numpy as np
from jax.experimental import pallas as pl
from jax.experimental.pallas import tpu as pltpu


LN_EPS = 1e-5
LANE = 128


def _round_up(n, m):
    return ((n + m - 1) // m) * m


def _layernorm(h, gamma, beta):
    # Two-pass variance (mean of centered squares): avoids the E[h^2] - mu^2
    # cancellation that can go slightly negative in f32 and NaN under rsqrt.
    mu = jnp.mean(h, axis=-1, keepdims=True)
    c = h - mu
    var = jnp.mean(c * c, axis=-1, keepdims=True)
    return c * jax.lax.rsqrt(var + LN_EPS) * gamma + beta


def transformer_kernel(
    x_ref,      # (bt, L, D)        compute dtype (bf16 default, f32 optional)
    wqkv_ref,   # (D, 3*dcol) cdt   fused Q|K|V proj, 128-aligned col blocks,
                #                   1/sqrt(D) folded into the Q columns
    wow2_ref,   # (D+FF, D) cdt     rows [0:D] = Wo^T, rows [D:] = W2^T
    w1_ref,     # (D, FF)  cdt      feedforward lin1
    wcr_ref,    # (2*D, d_out) cdt  rows [0:D] = Wc^T, rows [D:] = Wr^T
    bias_ref,   # (9, D)   f32      rows: bq*scale, bk, bv, bo, g1, be1, g2, be2, b2
    b1_ref,     # (1, FF)  f32
    bcr_ref,    # (1, d_out) f32    bc + br
    out_ref,    # (bt, L, d_out) f32
    *, bt, seq_len, d_model, dcol, attn_chunk,
):
    cdt = x_ref.dtype
    f32 = jnp.float32
    m = bt * seq_len
    d = d_model

    x2 = x_ref[...].reshape(m, d)

    bq = bias_ref[0:1, :]
    bk = bias_ref[1:2, :]
    bv = bias_ref[2:3, :]
    bo = bias_ref[3:4, :]
    g1 = bias_ref[4:5, :]
    be1 = bias_ref[5:6, :]
    g2 = bias_ref[6:7, :]
    be2 = bias_ref[7:8, :]
    b2 = bias_ref[8:9, :]

    # --- Fused Q/K/V projection: one (m, D) x (D, 3*dcol) MXU matmul, f32 acc.
    # Column blocks start at 128-lane boundaries -> slicing below is layout-free.
    qkv = jnp.dot(x2, wqkv_ref[...], preferred_element_type=f32)
    q = (qkv[:, 0:d] + bq).astype(cdt).reshape(bt, seq_len, d)
    k = (qkv[:, dcol:dcol + d] + bk).astype(cdt).reshape(bt, seq_len, d)
    v = (qkv[:, 2 * dcol:2 * dcol + d] + bv).reshape(bt, seq_len, d)   # stays f32

    # --- Single-head self-attention (1/sqrt(D) already folded into Wq/bq).
    # Chunk the batched micro-matmuls so MXU push/pop overlaps on v5e/v6e.
    attn_chunks = []
    for c0 in range(0, bt, attn_chunk):
        c1 = min(c0 + attn_chunk, bt)
        s = jnp.einsum("bqd,bkd->bqk", q[c0:c1], k[c0:c1],
                       preferred_element_type=f32)
        s = s - jnp.max(s, axis=-1, keepdims=True)
        p = jnp.exp(s)
        p = p * pl.reciprocal(jnp.sum(p, axis=-1, keepdims=True), approx=True)
        attn_chunks.append(
            jnp.einsum("bqk,bkd->bqd", p, v[c0:c1],
                       preferred_element_type=f32))     # P kept in f32 (K = L)
    attn = (attn_chunks[0] if len(attn_chunks) == 1
            else jnp.concatenate(attn_chunks, axis=0))
    attn = attn.reshape(m, d)
    attn = jnp.dot(attn.astype(cdt), wow2_ref[0:d, :],
                   preferred_element_type=f32) + bo

    # --- Post-norm residual block 1 (f32 stats) ---
    h1 = _layernorm(x2.astype(f32) + attn, g1, be1)

    # --- Feedforward (relu) ---
    ff = jnp.dot(h1.astype(cdt), w1_ref[...],
                 preferred_element_type=f32) + b1_ref[...]
    ff = jnp.maximum(ff, 0.0)
    ff = jnp.dot(ff.astype(cdt), wow2_ref[d:, :],
                 preferred_element_type=f32) + b2

    # --- Post-norm residual block 2 ---
    h2 = _layernorm(h1 + ff, g2, be2)

    # --- Output conv + residual conv as two dots summed (no lane concat) ---
    out = (jnp.dot(h2.astype(cdt), wcr_ref[0:d, :], preferred_element_type=f32)
           + jnp.dot(x2, wcr_ref[d:, :], preferred_element_type=f32)
           + bcr_ref[...])
    out_ref[...] = out.reshape(bt, seq_len, out_ref.shape[-1]).astype(out_ref.dtype)


def make_params(key, d_model, n_feats, d_out):
    ks = jax.random.split(key, 16)
    s = 0.1
    f32 = jnp.float32
    return {
        "wq": jax.random.normal(ks[0], (d_model, d_model), f32) * s,
        "bq": jax.random.normal(ks[1], (1, d_model), f32) * s,
        "wk": jax.random.normal(ks[2], (d_model, d_model), f32) * s,
        "bk": jax.random.normal(ks[3], (1, d_model), f32) * s,
        "wv": jax.random.normal(ks[4], (d_model, d_model), f32) * s,
        "bv": jax.random.normal(ks[5], (1, d_model), f32) * s,
        "wo": jax.random.normal(ks[6], (d_model, d_model), f32) * s,
        "bo": jax.random.normal(ks[7], (1, d_model), f32) * s,
        "g1": jnp.ones((1, d_model), f32),
        "be1": jnp.zeros((1, d_model), f32),
        "g2": jnp.ones((1, d_model), f32),
        "be2": jnp.zeros((1, d_model), f32),
        "w1": jax.random.normal(ks[8], (n_feats, d_model), f32) * s,
        "b1": jax.random.normal(ks[9], (1, n_feats), f32) * s,
        "w2": jax.random.normal(ks[10], (d_model, n_feats), f32) * s,
        "b2": jax.random.normal(ks[11], (1, d_model), f32) * s,
        "wc": jax.random.normal(ks[12], (d_out, d_model), f32) * s,
        "bc": jax.random.normal(ks[13], (1, d_out), f32) * s,
        "wr": jax.random.normal(ks[14], (d_out, d_model), f32) * s,
        "br": jax.random.normal(ks[15], (1, d_out), f32) * s,
    }


@functools.partial(jax.jit, static_argnames=("use_bf16",))
def transformer_forward(x, params, *, use_bf16=True):
    """x: (B, L, D) float32.  Returns (B, L, d_out) float32."""
    B, L, D = x.shape
    d_out = params["wc"].shape[0]
    cdt = jnp.bfloat16 if use_bf16 else jnp.float32
    f32 = jnp.float32

    # Batch block: target ~512 matmul rows per grid step, but keep >= 2 grid
    # steps when B >= 2 so both v7x TensorCores get work ("parallel" axis).
    bt = max(1, min(B, 512 // max(L, 1)))
    if B >= 2:
        bt = min(bt, pl.cdiv(B, 2))
    nb = pl.cdiv(B, bt)
    b_pad = nb * bt

    # HBM input stays at real feature width D (no lane inflation); single
    # pad (+cast) op for the batch remainder.
    xp = jnp.pad(x.astype(cdt), ((0, b_pad - B), (0, 0), (0, 0)))

    scale = 1.0 / math.sqrt(D)           # nhead == 1 -> head_dim == D
    dcol = _round_up(D, LANE)            # 128-aligned Q|K|V column blocks

    # Pre-transposed, fused, resident weights (host-side, one-time).
    wqkv = jnp.zeros((D, 3 * dcol), f32)
    wqkv = wqkv.at[:, 0:D].set(params["wq"].T * scale)        # scale folded in
    wqkv = wqkv.at[:, dcol:dcol + D].set(params["wk"].T)
    wqkv = wqkv.at[:, 2 * dcol:2 * dcol + D].set(params["wv"].T)
    wqkv = wqkv.astype(cdt)
    wow2 = jnp.concatenate([params["wo"].T, params["w2"].T], axis=0).astype(cdt)
    w1 = params["w1"].T.astype(cdt)
    wcr = jnp.concatenate([params["wc"].T, params["wr"].T], axis=0).astype(cdt)

    bias9 = jnp.concatenate(
        [params["bq"] * scale, params["bk"], params["bv"], params["bo"],
         params["g1"], params["be1"], params["g2"], params["be2"],
         params["b2"]], axis=0).astype(f32)                   # (9, D)
    b1 = params["b1"].astype(f32)                             # (1, FF)
    bcr = (params["bc"] + params["br"]).astype(f32)           # (1, d_out)

    plist = [wqkv, wow2, w1, wcr, bias9, b1, bcr]

    in_specs = [pl.BlockSpec((bt, L, D), lambda b: (b, 0, 0))]
    for p in plist:
        # Constant index_map -> weights stay resident; no per-step re-fetch.
        in_specs.append(pl.BlockSpec(p.shape, lambda b, _nd=p.ndim: (0,) * _nd))
    out_specs = pl.BlockSpec((bt, L, d_out), lambda b: (b, 0, 0))

    kernel = functools.partial(
        transformer_kernel, bt=bt, seq_len=L, d_model=D, dcol=dcol,
        attn_chunk=min(bt, 16))

    # Request only the actual footprint (blocks double-buffered) plus
    # headroom, capped well below v7x's 64 MiB physical VMEM.
    itemsize = 2 if use_bf16 else 4
    footprint = (2 * bt * L * D * itemsize + 2 * bt * L * d_out * 4
                 + 2 * sum(int(np.prod(p.shape)) * p.dtype.itemsize
                           for p in plist))
    vmem_limit = int(min(48 * 1024 * 1024,
                         max(32 * 1024 * 1024, 4 * footprint)))

    out = pl.pallas_call(
        kernel,
        out_shape=jax.ShapeDtypeStruct((b_pad, L, d_out), jnp.float32),
        grid=(nb,),
        in_specs=in_specs,
        out_specs=out_specs,
        compiler_params=pltpu.CompilerParams(
            dimension_semantics=("parallel",),
            vmem_limit_bytes=vmem_limit),
    )(xp, *plist)

    return out[:B]


def reference_forward(x, params):
    """Pure-JAX f32 reference mirroring the PyTorch forward (eval mode)."""
    D = x.shape[-1]

    def ln(h, g, b):
        mu = jnp.mean(h, axis=-1, keepdims=True)
        var = jnp.mean((h - mu) ** 2, axis=-1, keepdims=True)
        return (h - mu) / jnp.sqrt(var + LN_EPS) * g + b

    q = x @ params["wq"].T + params["bq"]
    k = x @ params["wk"].T + params["bk"]
    v = x @ params["wv"].T + params["bv"]
    s = jnp.einsum("bld,bmd->blm", q, k) / math.sqrt(D)
    p = jax.nn.softmax(s, axis=-1)
    attn = jnp.einsum("blm,bmd->bld", p, v)
    attn = attn @ params["wo"].T + params["bo"]
    h1 = ln(x + attn, params["g1"], params["be1"])
    ff = jnp.maximum(h1 @ params["w1"].T + params["b1"], 0.0)
    ff = ff @ params["w2"].T + params["b2"]
    h2 = ln(h1 + ff, params["g2"], params["be2"])
    conv_out = h2 @ params["wc"].T + params["bc"]
    res = x @ params["wr"].T + params["br"]
    return res + conv_out


if __name__ == "__main__":
    B, L, D = 2, 8, 32          # batch, sequence, features (d_model)
    N_FEATS = 32                # dim_feedforward (kept small for the demo)
    D_OUT = D                   # n_outputs=None -> output_size = input_size

    key = jax.random.PRNGKey(0)
    kx, kp = jax.random.split(key)
    x = jax.random.normal(kx, (B, L, D), jnp.float32)
    params = make_params(kp, D, N_FEATS, D_OUT)

    ref = reference_forward(x, params)

    # Default path: bf16 matmul inputs on every TPU generation (MXU-native);
    # LayerNorm / softmax / bias adds / accumulation stay f32.  Intentional
    # inference-precision relaxation vs. the f32 PyTorch reference.
    out = jax.block_until_ready(transformer_forward(x, params))
    max_err = float(jnp.max(jnp.abs(out - ref)))
    assert max_err < 0.2, f"bf16 path max abs err too large: {max_err}"

    # f32 matmul-input path kept for a tight numerical check.
    out_f32 = jax.block_until_ready(transformer_forward(x, params, use_bf16=False))
    np.testing.assert_allclose(np.asarray(out_f32), np.asarray(ref),
                               rtol=2e-2, atol=2e-2)

    print("KERNEL_OK")
</pallas_src>

<mosaic_0001>
module attributes {stable_mosaic.version = 11 : i64} {
  func.func @transformer_kernel(%arg0: i32, %arg1: memref<1x8x32xbf16, #tpu.memory_space<vmem>>, %arg2: memref<32x384xbf16, #tpu.memory_space<vmem>>, %arg3: memref<64x32xbf16, #tpu.memory_space<vmem>>, %arg4: memref<32x32xbf16, #tpu.memory_space<vmem>>, %arg5: memref<64x32xbf16, #tpu.memory_space<vmem>>, %arg6: memref<9x32xf32, #tpu.memory_space<vmem>>, %arg7: memref<1x32xf32, #tpu.memory_space<vmem>>, %arg8: memref<1x32xf32, #tpu.memory_space<vmem>>, %arg9: memref<1x8x32xf32, #tpu.memory_space<vmem>>) attributes {dimension_semantics = [#tpu.dimension_semantics<parallel>], iteration_bounds = array<i64: 2>, scalar_prefetch = 0 : i64, scratch_operands = 0 : i64, tpu.core_type = #tpu.core_type<tc>, window_params = [{transform_indices = @transform_0, window_bounds = array<i64: 1, 8, 32>}, {pipeline_mode = #tpu.pipeline_mode<synchronous>, transform_indices = @transform_1, window_bounds = array<i64: 32, 384>}, {pipeline_mode = #tpu.pipeline_mode<synchronous>, transform_indices = @transform_2, window_bounds = array<i64: 64, 32>}, {pipeline_mode = #tpu.pipeline_mode<synchronous>, transform_indices = @transform_3, window_bounds = array<i64: 32, 32>}, {pipeline_mode = #tpu.pipeline_mode<synchronous>, transform_indices = @transform_4, window_bounds = array<i64: 64, 32>}, {pipeline_mode = #tpu.pipeline_mode<synchronous>, transform_indices = @transform_5, window_bounds = array<i64: 9, 32>}, {pipeline_mode = #tpu.pipeline_mode<synchronous>, transform_indices = @transform_6, window_bounds = array<i64: 1, 32>}, {pipeline_mode = #tpu.pipeline_mode<synchronous>, transform_indices = @transform_7, window_bounds = array<i64: 1, 32>}, {transform_indices = @transform_8, window_bounds = array<i64: 1, 8, 32>}]} {
    %c0 = arith.constant 0 : index
    %c0_0 = arith.constant 0 : index
    %c0_1 = arith.constant 0 : index
    %0 = vector.load %arg1[%c0, %c0_0, %c0_1] : memref<1x8x32xbf16, #tpu.memory_space<vmem>>, vector<1x8x32xbf16>
    %1 = vector.shape_cast %0 : vector<1x8x32xbf16> to vector<8x32xbf16>
    %c0_2 = arith.constant 0 : index
    %c0_3 = arith.constant 0 : index
    %2 = vector.load %arg6[%c0_2, %c0_3] : memref<9x32xf32, #tpu.memory_space<vmem>>, vector<1x32xf32>
    %c1 = arith.constant 1 : index
    %c0_4 = arith.constant 0 : index
    %3 = vector.load %arg6[%c1, %c0_4] : memref<9x32xf32, #tpu.memory_space<vmem>>, vector<1x32xf32>
    %c2 = arith.constant 2 : index
    %c0_5 = arith.constant 0 : index
    %4 = vector.load %arg6[%c2, %c0_5] : memref<9x32xf32, #tpu.memory_space<vmem>>, vector<1x32xf32>
    %c3 = arith.constant 3 : index
    %c0_6 = arith.constant 0 : index
    %5 = vector.load %arg6[%c3, %c0_6] : memref<9x32xf32, #tpu.memory_space<vmem>>, vector<1x32xf32>
    %c4 = arith.constant 4 : index
    %c0_7 = arith.constant 0 : index
    %6 = vector.load %arg6[%c4, %c0_7] : memref<9x32xf32, #tpu.memory_space<vmem>>, vector<1x32xf32>
    %c5 = arith.constant 5 : index
    %c0_8 = arith.constant 0 : index
    %7 = vector.load %arg6[%c5, %c0_8] : memref<9x32xf32, #tpu.memory_space<vmem>>, vector<1x32xf32>
    %c6 = arith.constant 6 : index
    %c0_9 = arith.constant 0 : index
    %8 = vector.load %arg6[%c6, %c0_9] : memref<9x32xf32, #tpu.memory_space<vmem>>, vector<1x32xf32>
    %c7 = arith.constant 7 : index
    %c0_10 = arith.constant 0 : index
    %9 = vector.load %arg6[%c7, %c0_10] : memref<9x32xf32, #tpu.memory_space<vmem>>, vector<1x32xf32>
    %c8 = arith.constant 8 : index
    %c0_11 = arith.constant 0 : index
    %10 = vector.load %arg6[%c8, %c0_11] : memref<9x32xf32, #tpu.memory_space<vmem>>, vector<1x32xf32>
    %c0_12 = arith.constant 0 : index
    %c0_13 = arith.constant 0 : index
    %11 = vector.load %arg2[%c0_12, %c0_13] : memref<32x384xbf16, #tpu.memory_space<vmem>>, vector<32x384xbf16>
    %cst = arith.constant dense<0.000000e+00> : vector<8x384xf32>
    %12 = tpu.matmul %1, %11, %cst {dimension_numbers = #tpu.dot_dimension_numbers<[1], [0], [0], [1], [0, 0, 1, 1], [], []>} : vector<8x32xbf16>, vector<32x384xbf16>, vector<8x384xf32> -> vector<8x384xf32>
    %13 = vector.extract_strided_slice %12 {offsets = [0, 0], sizes = [8, 32], strides = [1, 1]} : vector<8x384xf32> to vector<8x32xf32>
    %14 = vector.broadcast %2 : vector<1x32xf32> to vector<8x32xf32>
    %15 = arith.addf %13, %14 : vector<8x32xf32>
    %16 = arith.truncf %15 : vector<8x32xf32> to vector<8x32xbf16>
    %17 = vector.shape_cast %16 : vector<8x32xbf16> to vector<1x8x32xbf16>
    %18 = vector.extract_strided_slice %12 {offsets = [0, 128], sizes = [8, 32], strides = [1, 1]} : vector<8x384xf32> to vector<8x32xf32>
    %19 = vector.broadcast %3 : vector<1x32xf32> to vector<8x32xf32>
    %20 = arith.addf %18, %19 : vector<8x32xf32>
    %21 = arith.truncf %20 : vector<8x32xf32> to vector<8x32xbf16>
    %22 = vector.shape_cast %21 : vector<8x32xbf16> to vector<1x8x32xbf16>
    %23 = vector.extract_strided_slice %12 {offsets = [0, 256], sizes = [8, 32], strides = [1, 1]} : vector<8x384xf32> to vector<8x32xf32>
    %24 = vector.broadcast %4 : vector<1x32xf32> to vector<8x32xf32>
    %25 = arith.addf %23, %24 : vector<8x32xf32>
    %26 = vector.shape_cast %25 : vector<8x32xf32> to vector<1x8x32xf32>
    "tpu.trace_start"() <{level = 10 : i32, message = "bqd,bkd->bqk"}> : () -> ()
    %cst_14 = arith.constant dense<0.000000e+00> : vector<1x8x8xf32>
    %27 = tpu.matmul %17, %22, %cst_14 {dimension_numbers = #tpu.dot_dimension_numbers<[2], [2], [1], [1], [0, 0, 0, 1, 1, 1], [0], [0]>} : vector<1x8x32xbf16>, vector<1x8x32xbf16>, vector<1x8x8xf32> -> vector<1x8x8xf32>
    "tpu.trace_stop"() : () -> ()
    %cst_15 = arith.constant dense<0xFF800000> : vector<1x8xf32>
    %28 = vector.multi_reduction <maximumf>, %27, %cst_15 [2] : vector<1x8x8xf32> to vector<1x8xf32>
    %29 = vector.shape_cast %28 : vector<1x8xf32> to vector<1x8x1xf32>
    %30 = vector.broadcast %29 : vector<1x8x1xf32> to vector<1x8x8xf32>
    %31 = arith.subf %27, %30 : vector<1x8x8xf32>
    %32 = math.exp %31 : vector<1x8x8xf32>
    %cst_16 = arith.constant dense<0.000000e+00> : vector<1x8xf32>
    %33 = vector.multi_reduction <add>, %32, %cst_16 [2] : vector<1x8x8xf32> to vector<1x8xf32>
    %34 = vector.shape_cast %33 : vector<1x8xf32> to vector<1x8x1xf32>
    %35 = tpu.reciprocal %34 {approx = true} : vector<1x8x1xf32> -> vector<1x8x1xf32>
    %36 = vector.broadcast %35 : vector<1x8x1xf32> to vector<1x8x8xf32>
    %37 = arith.mulf %32, %36 : vector<1x8x8xf32>
    "tpu.trace_start"() <{level = 10 : i32, message = "bqk,bkd->bqd"}> : () -> ()
    %cst_17 = arith.constant dense<0.000000e+00> : vector<1x8x32xf32>
    %38 = tpu.matmul %37, %26, %cst_17 {dimension_numbers = #tpu.dot_dimension_numbers<[2], [1], [1], [2], [0, 0, 0, 1, 1, 2], [0], [0]>} : vector<1x8x8xf32>, vector<1x8x32xf32>, vector<1x8x32xf32> -> vector<1x8x32xf32>
    "tpu.trace_stop"() : () -> ()
    %39 = vector.shape_cast %38 : vector<1x8x32xf32> to vector<8x32xf32>
    %40 = arith.truncf %39 : vector<8x32xf32> to vector<8x32xbf16>
    %c0_18 = arith.constant 0 : index
    %c0_19 = arith.constant 0 : index
    %41 = vector.load %arg3[%c0_18, %c0_19] : memref<64x32xbf16, #tpu.memory_space<vmem>>, vector<32x32xbf16>
    %cst_20 = arith.constant dense<0.000000e+00> : vector<8x32xf32>
    %42 = tpu.matmul %40, %41, %cst_20 {dimension_numbers = #tpu.dot_dimension_numbers<[1], [0], [0], [1], [0, 0, 1, 1], [], []>} : vector<8x32xbf16>, vector<32x32xbf16>, vector<8x32xf32> -> vector<8x32xf32>
    %43 = vector.broadcast %5 : vector<1x32xf32> to vector<8x32xf32>
    %44 = arith.addf %42, %43 : vector<8x32xf32>
    %45 = arith.extf %1 : vector<8x32xbf16> to vector<8x32xf32>
    %46 = arith.addf %45, %44 : vector<8x32xf32>
    %cst_21 = arith.constant dense<0.000000e+00> : vector<8xf32>
    %47 = vector.multi_reduction <add>, %46, %cst_21 [1] : vector<8x32xf32> to vector<8xf32>
    %48 = vector.shape_cast %47 : vector<8xf32> to vector<8x1xf32>
    %cst_22 = arith.constant 3.200000e+01 : f32
    %49 = vector.broadcast %cst_22 : f32 to vector<8x1xf32>
    %50 = arith.divf %48, %49 : vector<8x1xf32>
    %51 = vector.broadcast %50 : vector<8x1xf32> to vector<8x32xf32>
    %52 = arith.subf %46, %51 : vector<8x32xf32>
    %53 = arith.mulf %52, %52 : vector<8x32xf32>
    %cst_23 = arith.constant dense<0.000000e+00> : vector<8xf32>
    %54 = vector.multi_reduction <add>, %53, %cst_23 [1] : vector<8x32xf32> to vector<8xf32>
    %55 = vector.shape_cast %54 : vector<8xf32> to vector<8x1xf32>
    %cst_24 = arith.constant 3.200000e+01 : f32
    %56 = vector.broadcast %cst_24 : f32 to vector<8x1xf32>
    %57 = arith.divf %55, %56 : vector<8x1xf32>
    %cst_25 = arith.constant 9.99999974E-6 : f32
    %58 = vector.broadcast %cst_25 : f32 to vector<8x1xf32>
    %59 = arith.addf %57, %58 : vector<8x1xf32>
    %60 = math.rsqrt %59 : vector<8x1xf32>
    %61 = vector.broadcast %60 : vector<8x1xf32> to vector<8x32xf32>
    %62 = arith.mulf %52, %61 : vector<8x32xf32>
    %63 = vector.broadcast %6 : vector<1x32xf32> to vector<8x32xf32>
    %64 = arith.mulf %62, %63 : vector<8x32xf32>
    %65 = vector.broadcast %7 : vector<1x32xf32> to vector<8x32xf32>
    %66 = arith.addf %64, %65 : vector<8x32xf32>
    %67 = arith.truncf %66 : vector<8x32xf32> to vector<8x32xbf16>
    %c0_26 = arith.constant 0 : index
    %c0_27 = arith.constant 0 : index
    %68 = vector.load %arg4[%c0_26, %c0_27] : memref<32x32xbf16, #tpu.memory_space<vmem>>, vector<32x32xbf16>
    %cst_28 = arith.constant dense<0.000000e+00> : vector<8x32xf32>
    %69 = tpu.matmul %67, %68, %cst_28 {dimension_numbers = #tpu.dot_dimension_numbers<[1], [0], [0], [1], [0, 0, 1, 1], [], []>} : vector<8x32xbf16>, vector<32x32xbf16>, vector<8x32xf32> -> vector<8x32xf32>
    %c0_29 = arith.constant 0 : index
    %c0_30 = arith.constant 0 : index
    %70 = vector.load %arg7[%c0_29, %c0_30] : memref<1x32xf32, #tpu.memory_space<vmem>>, vector<1x32xf32>
    %71 = vector.broadcast %70 : vector<1x32xf32> to vector<8x32xf32>
    %72 = arith.addf %69, %71 : vector<8x32xf32>
    %cst_31 = arith.constant 0.000000e+00 : f32
    %73 = vector.broadcast %cst_31 : f32 to vector<8x32xf32>
    %74 = arith.maximumf %72, %73 : vector<8x32xf32>
    %75 = arith.truncf %74 : vector<8x32xf32> to vector<8x32xbf16>
    %c32 = arith.constant 32 : index
    %c0_32 = arith.constant 0 : index
    %76 = vector.load %arg3[%c32, %c0_32] : memref<64x32xbf16, #tpu.memory_space<vmem>>, vector<32x32xbf16>
    %cst_33 = arith.constant dense<0.000000e+00> : vector<8x32xf32>
    %77 = tpu.matmul %75, %76, %cst_33 {dimension_numbers = #tpu.dot_dimension_numbers<[1], [0], [0], [1], [0, 0, 1, 1], [], []>} : vector<8x32xbf16>, vector<32x32xbf16>, vector<8x32xf32> -> vector<8x32xf32>
    %78 = vector.broadcast %10 : vector<1x32xf32> to vector<8x32xf32>
    %79 = arith.addf %77, %78 : vector<8x32xf32>
    %80 = arith.addf %66, %79 : vector<8x32xf32>
    %cst_34 = arith.constant dense<0.000000e+00> : vector<8xf32>
    %81 = vector.multi_reduction <add>, %80, %cst_34 [1] : vector<8x32xf32> to vector<8xf32>
    %82 = vector.shape_cast %81 : vector<8xf32> to vector<8x1xf32>
    %cst_35 = arith.constant 3.200000e+01 : f32
    %83 = vector.broadcast %cst_35 : f32 to vector<8x1xf32>
    %84 = arith.divf %82, %83 : vector<8x1xf32>
    %85 = vector.broadcast %84 : vector<8x1xf32> to vector<8x32xf32>
    %86 = arith.subf %80, %85 : vector<8x32xf32>
    %87 = arith.mulf %86, %86 : vector<8x32xf32>
    %cst_36 = arith.constant dense<0.000000e+00> : vector<8xf32>
    %88 = vector.multi_reduction <add>, %87, %cst_36 [1] : vector<8x32xf32> to vector<8xf32>
    %89 = vector.shape_cast %88 : vector<8xf32> to vector<8x1xf32>
    %cst_37 = arith.constant 3.200000e+01 : f32
    %90 = vector.broadcast %cst_37 : f32 to vector<8x1xf32>
    %91 = arith.divf %89, %90 : vector<8x1xf32>
    %cst_38 = arith.constant 9.99999974E-6 : f32
    %92 = vector.broadcast %cst_38 : f32 to vector<8x1xf32>
    %93 = arith.addf %91, %92 : vector<8x1xf32>
    %94 = math.rsqrt %93 : vector<8x1xf32>
    %95 = vector.broadcast %94 : vector<8x1xf32> to vector<8x32xf32>
    %96 = arith.mulf %86, %95 : vector<8x32xf32>
    %97 = vector.broadcast %8 : vector<1x32xf32> to vector<8x32xf32>
    %98 = arith.mulf %96, %97 : vector<8x32xf32>
    %99 = vector.broadcast %9 : vector<1x32xf32> to vector<8x32xf32>
    %100 = arith.addf %98, %99 : vector<8x32xf32>
    %101 = arith.truncf %100 : vector<8x32xf32> to vector<8x32xbf16>
    %c0_39 = arith.constant 0 : index
    %c0_40 = arith.constant 0 : index
    %102 = vector.load %arg5[%c0_39, %c0_40] : memref<64x32xbf16, #tpu.memory_space<vmem>>, vector<32x32xbf16>
    %cst_41 = arith.constant dense<0.000000e+00> : vector<8x32xf32>
    %103 = tpu.matmul %101, %102, %cst_41 {dimension_numbers = #tpu.dot_dimension_numbers<[1], [0], [0], [1], [0, 0, 1, 1], [], []>} : vector<8x32xbf16>, vector<32x32xbf16>, vector<8x32xf32> -> vector<8x32xf32>
    %c32_42 = arith.constant 32 : index
    %c0_43 = arith.constant 0 : index
    %104 = vector.load %arg5[%c32_42, %c0_43] : memref<64x32xbf16, #tpu.memory_space<vmem>>, vector<32x32xbf16>
    %cst_44 = arith.constant dense<0.000000e+00> : vector<8x32xf32>
    %105 = tpu.matmul %1, %104, %cst_44 {dimension_numbers = #tpu.dot_dimension_numbers<[1], [0], [0], [1], [0, 0, 1, 1], [], []>} : vector<8x32xbf16>, vector<32x32xbf16>, vector<8x32xf32> -> vector<8x32xf32>
    %106 = arith.addf %103, %105 : vector<8x32xf32>
    %c0_45 = arith.constant 0 : index
    %c0_46 = arith.constant 0 : index
    %107 = vector.load %arg8[%c0_45, %c0_46] : memref<1x32xf32, #tpu.memory_space<vmem>>, vector<1x32xf32>
    %108 = vector.broadcast %107 : vector<1x32xf32> to vector<8x32xf32>
    %109 = arith.addf %106, %108 : vector<8x32xf32>
    %110 = vector.shape_cast %109 : vector<8x32xf32> to vector<1x8x32xf32>
    %c0_47 = arith.constant 0 : index
    %c0_48 = arith.constant 0 : index
    %c0_49 = arith.constant 0 : index
    %111 = vector.load %arg9[%c0_47, %c0_48, %c0_49] : memref<1x8x32xf32, #tpu.memory_space<vmem>>, vector<1x8x32xf32>
    tpu.vector_store %arg9[%c0_47, %c0_48, %c0_49], %110 {strides = array<i32>} : memref<1x8x32xf32, #tpu.memory_space<vmem>>, vector<1x8x32xf32>,
    return
  }
  func.func @transform_0(%arg0: i32) -> (i32, i32, i32) {
    %c0_i32 = arith.constant 0 : i32
    %c0_i32_0 = arith.constant 0 : i32
    %c0_i32_1 = arith.constant 0 : i32
    return %arg0, %c0_i32, %c0_i32_0 : i32, i32, i32
  }
  func.func @transform_1(%arg0: i32) -> (i32, i32) {
    %c0_i32 = arith.constant 0 : i32
    %c0_i32_0 = arith.constant 0 : i32
    %c0_i32_1 = arith.constant 0 : i32
    return %c0_i32, %c0_i32_0 : i32, i32
  }
  func.func @transform_2(%arg0: i32) -> (i32, i32) {
    %c0_i32 = arith.constant 0 : i32
    %c0_i32_0 = arith.constant 0 : i32
    %c0_i32_1 = arith.constant 0 : i32
    return %c0_i32, %c0_i32_0 : i32, i32
  }
  func.func @transform_3(%arg0: i32) -> (i32, i32) {
    %c0_i32 = arith.constant 0 : i32
    %c0_i32_0 = arith.constant 0 : i32
    %c0_i32_1 = arith.constant 0 : i32
    return %c0_i32, %c0_i32_0 : i32, i32
  }
  func.func @transform_4(%arg0: i32) -> (i32, i32) {
    %c0_i32 = arith.constant 0 : i32
    %c0_i32_0 = arith.constant 0 : i32
    %c0_i32_1 = arith.constant 0 : i32
    return %c0_i32, %c0_i32_0 : i32, i32
  }
  func.func @transform_5(%arg0: i32) -> (i32, i32) {
    %c0_i32 = arith.constant 0 : i32
    %c0_i32_0 = arith.constant 0 : i32
    %c0_i32_1 = arith.constant 0 : i32
    return %c0_i32, %c0_i32_0 : i32, i32
  }
  func.func @transform_6(%arg0: i32) -> (i32, i32) {
    %c0_i32 = arith.constant 0 : i32
    %c0_i32_0 = arith.constant 0 : i32
    %c0_i32_1 = arith.constant 0 : i32
    return %c0_i32, %c0_i32_0 : i32, i32
  }
  func.func @transform_7(%arg0: i32) -> (i32, i32) {
    %c0_i32 = arith.constant 0 : i32
    %c0_i32_0 = arith.constant 0 : i32
    %c0_i32_1 = arith.constant 0 : i32
    return %c0_i32, %c0_i32_0 : i32, i32
  }
  func.func @transform_8(%arg0: i32) -> (i32, i32, i32) {
    %c0_i32 = arith.constant 0 : i32
    %c0_i32_0 = arith.constant 0 : i32
    %c0_i32_1 = arith.constant 0 : i32
    return %arg0, %c0_i32, %c0_i32_0 : i32, i32, i32
  }
}

</mosaic_0001>

<bundles_post_ra>
// kernel: transformer_forward.1
= control target key start
LH: loop header
LB: loop body
LE: loop exit
PB: predicated region body
PF: predicated region fallthrough
CT: control target
= control target key end

     0   :  { %13 = vsyncpa [#allocation3], 0  ;;  %s1571_s0 = inlined_call_operand.vmem [shape: bf16[2,8,32], index: 0, kind: input, shape index: {}]   ;;  %s1572_s1 = inlined_call_operand.vmem [shape: bf16[32,384], index: 1, kind: input, shape index: {}]   ;;  %s1573_s2 = inlined_call_operand.vmem [shape: bf16[64,32], index: 2, kind: input, shape index: {}]   ;;  %s1574_s3 = inlined_call_operand.vmem [shape: bf16[32,32], index: 3, kind: input, shape index: {}]   ;;  %s1575_s4 = inlined_call_operand.vmem [shape: bf16[64,32], index: 4, kind: input, shape index: {}]   ;;  %s1576_s5 = inlined_call_operand.vmem [shape: f32[9,32], index: 5, kind: input, shape index: {}]   ;;  %s1577_s6 = inlined_call_operand.vmem [shape: f32[1,32], index: 6, kind: input, shape index: {}]   ;;  %s1578_s7 = inlined_call_operand.vmem [shape: f32[1,32], index: 7, kind: input, shape index: {}]   ;;  %s1579_s8 = inlined_call_operand.hbm [shape: f32[2,8,32], index: 8, kind: output, shape index: {}]  }
   0x1   :  { %15 = vsyncpa [#allocation3 + $0x1], 0  ;;  %s1337_s27 = smov 0   ;;  %s1339_s28 = smov 0  }
   0x2   :  { %s1341_s29 = smov 0   ;;  %s1343_s30 = smov 0  }
   0x3 LB: > { %s1358_s9 = sadd.s32 4294967295, %s1286_s30   ;;  %s1029_s10 = sadd.s32 4294967294, %s1286_s30   ;;  %s1286_s30 = sphi %s1343_s30, %s1585_s30   ;;  %s1282_s29 = sphi %s1341_s29, %s1584_s29   ;;  %s1278_s28 = sphi %s1339_s28, %s1583_s28   ;;  %s1274_s27 = sphi %s1337_s27, %s1582_s27  }
   0x4   : > { %s1362_s11 = sadd.s32 1, %s1286_s30   ;;  %s201_s12 = sadd.s32 1, %s1282_s29 }
   0x5   : > { %s198_s13 = ssub.s32 %s1286_s30, %s1362_s11  ;;  %p211_p0 = scmp.ne.s32.totalorder %s1282_s29, %s1278_s28 }
   0x6   : > { %p199_p1 = scmp.eq.s32.totalorder %s198_s13, 0  ;;  %p212_p2 = scmp.eq.s32.totalorder %s1358_s9, 1 }
   0x7   : > { %p217_p3 = scmp.ne.s32.totalorder %s1278_s28, %s1274_s27  ;;  %p218_p4 = scmp.eq.s32.totalorder %s1029_s10, 1 }
   0x8   : > { %s1373_s14 = scalar_select %p199_p1, %s1282_s29, %s201_s12  }
   0x9   : > { %p1375_p5 = por %p212_p2, %p211_p0  ;;  %p1379_p6 = por %p218_p4, %p217_p3 }
   0xa   : > { %p1032_p7 = scmp.ge.s32.totalorder %s1286_s30, 1  ;;  %p264_p8 = scmp.lt.s32.totalorder %s1286_s30, 3 }
   0xc   : > { %p265_p9 = pnand %p1032_p7, %p264_p8 }
   0xd   : > { %v1198_v0 = vld [vmem:[%s1572_s1 + $0x4] ss:$12 sps:$4 sm:$0xff] (!%p265_p9)   ;;  %p297_p10 = scmp.lt.s32.totalorder (!%p265_p9), %s1358_s9, 1  ;;  %v1200_v1 = vld [vmem:[%s1572_s1] ss:$12 sps:$4 sm:$0xff] (!%p265_p9)   ;;  %v1288_v2 = vmov (!%p265_p9), 0  }
   0xe   : > { %268 = sbr.rel (%p265_p9) target bundleno = 2501 (0x9c5), region = 52  ;;  %388 = vmatprep.mubr.bf16.mxu0 (!%p265_p9), %v1288_v2  ;;  %356 = vmatprep.subr.bf16.mxu0 (!%p265_p9), %v1198_v0  ;;  %v1201_v3 = vld [vmem:[%s1572_s1 + $0x1c] ss:$12 sps:$4 sm:$0xff] (!%p265_p9)   ;;  %v1203_v4 = vld [vmem:[%s1572_s1 + $0x18] ss:$12 sps:$4 sm:$0xff] (!%p265_p9)   ;;  %vm352_vm0 = vcmask (!%p265_p9), 261120  }
   0xf   : > { %357 = vmatpush1.bf16.msra.mxu0 (!%p265_p9), %v1200_v1  ;;  %v1289_v6 = vmov (!%p265_p9), 0.0   ;;  %vm1290_vm1 = vmmov (!%p265_p9), 0   ;;  %v1044_v7 = vld [vmem:[%s1576_s5 + $0x1] ss:$0 sm:$0xff] (!%p265_p9)  ;;  %v1043_v14 = vld [vmem:[%s1576_s5] ss:$0 sm:$0xff] (!%p265_p9) }
  0x10   : > { %358 = vmatprep.subr.bf16.mxu0 (!%p265_p9), %v1201_v3  ;;  %1097 = vmatprep.subr.bf16.mxu1 (!%p265_p9), %v1289_v6  ;;  %v1204_v18 = vld [vmem:[%s1572_s1 + $0x8] ss:$12 sps:$4 sm:$0xff] (!%p265_p9)   ;;  %v1205_v19 = vld [vmem:[%s1572_s1 + $0x20] ss:$12 sps:$4 sm:$0xff] (!%p265_p9)   ;;  %vm500_vm2 = vcmask (!%p265_p9), 64512   ;;  %s294_s22 = sand.u32 (!%p265_p9), 1, %s1278_s28  }
  0x11   : > { %1101 = vmatprep.mubr.msk.bf16.mxu1 (!%p265_p9), %vm1290_vm1, %v1289_v6  ;;  %1098 = vmatpush3.bf16.msra.mxu1 (!%p265_p9), %v1204_v18  ;;  %v1045_v33 = vld [vmem:[%s1576_s5 + $0x2] ss:$0 sm:$0xff] (!%p265_p9)  ;;  %v1207_v40 = vld [vmem:[%s1573_s2 + $0x8] sm:$0xff] (!%p265_p9)   ;;  %v1048_v44 = vld [vmem:[%s1576_s5 + $0x3] ss:$0 sm:$0xff] (!%p265_p9)  ;;  %s1291_s20 = smov (!%p265_p9), [#allocation2]  }
  0x12   : > { %1099 = vmatprep.subr.bf16.mxu1 (!%p265_p9), %v1289_v6  ;;  %v1206_v36 = vld [vmem:[%s1573_s2] sm:$0xff] (!%p265_p9)   ;;  %v1209_v59 = vld [vmem:[%s1574_s3 + $0x8] sm:$0xff] (!%p265_p9)   ;;  %s1228_s21 = sshll.u32 (!%p265_p9), %s1291_s20, 4  ;;  %s1229_s21 = int_to_ptr.vmem [resolvable:$false] %s1228_s21 }
  0x13   : > { %359 = vmatpush1.bf16.msra.mxu0 (!%p265_p9), %v1203_v4  ;;  %v1208_v58 = vld [vmem:[%s1574_s3] sm:$0xff] (!%p265_p9)   ;;  %v1058_v18 = vld [vmem:[%s1576_s5 + $0x8] ss:$0 sm:$0xff] (!%p265_p9) }
  0x14   : > { %1105 = vmatprep.subr.bf16.mxu0 (!%p265_p9), %v1289_v6  ;;  %v1052_v0 = vld [vmem:[%s1576_s5 + $0x4] ss:$0 sm:$0xff] (!%p265_p9)  ;;  %v1053_v2 = vld [vmem:[%s1576_s5 + $0x5] ss:$0 sm:$0xff] (!%p265_p9) }
  0x15   : > { %s298_s23 = scalar_select %p297_p10, %s1358_s9, 1  ;;  %1100 = vmatpush3.bf16.msra.mxu1 %v1205_v19 }
  0x16   : > { %1111 = vmatprep.subr.mxu1 %v1289_v6 }
  0x17   : > { %s1034_s26 = sshll.u32 %s298_s23, 2  ;;  %s1033_s23 = sshll.u32 %s294_s22, 3 }
  0x18   : > { %s300_s13 = scalar_lea.vmem %s1571_s0, %s1034_s26  ;;  %s1072_s26 = sshll.u32 %s1358_s9, 7 }
  0x19   : > { %v1402_v5 = vld [vmem:[%s300_s13] sm:$0xf]  ;;  %s296_s10 = scalar_lea.vmem [#allocation2], %s1033_s23  ;;  %s1528_s18 = scalar_lea.hbm %s1579_s8, %s1072_s26 }
  0x1a   : > { %1041 = vmatmul.mubr.msk.bf16.vlgmr.msra.gmra.mrb[0].mxu0 %vm352_vm0, %v1402_v5  ;;  %1102 = vmatmul.mubr.msk.bf16.vlgmr.msra.gmra.mrb[0].mxu1 %vm352_vm0, %v1402_v5  ;;  %v649_v45 = vunpack.c.l.bf16 %v1402_v5  ;;  %s970_s12 = sshll.u32 %s296_s10, 4  ;;  %s957_s9 = scalar_lea.sflag [#allocation3], %s294_s22  ;;  %s1530_s12 = int_to_ptr.vmem [resolvable:$true] %s970_s12 }
  0x1b   : > { %1107 = vmatprep.mubr.msk.bf16.mxu0 %vm1290_vm1, %v1289_v6  ;;  %1113 = vmatprep.mubr.msk.f32.mxu1 %vm1290_vm1, %v1289_v6  ;;  %s1224_s19 = scalar_lea.vmem %s1530_s12, 128  ;;  %s1230_s23 = scalar_lea.vmem %s1229_s21, 256 }
  0x1c   : > { %p1225_p11 = scmp.ne.s32.totalorder %s1530_s12, %s1224_s19  ;;  %p1231_p0 = scmp.lt.s32.totalorder %s1530_s12, %s1229_s21 }
  0x1d   : > { %p1232_p1 = scmp.lt.s32.totalorder %s1230_s23, %s1224_s19 }
  0x1e   : > { %p1226_p12 = pnand %p1225_p11, %p1375_p5 }
  0x1f   : > { %p1233_p2 = por %p1232_p1, %p1231_p0 }
  0x20   : > { %p1227_p13 = pneg %p1226_p12 }
  0x22   : > { %p1234_p3 = pnand %p1233_p2, %p1227_p13 }
  0xed   : > { %v390_v8 = vpop.f32.mrb[0].mxu0  ;;  %v431_v30 = vpop.f32.mrb[0].mxu1 }
  0xee   : > { %v392_v9 = vpop.f32.mrb[1].mxu0  ;;  %v441_v16 = vadd.f32 %v1043_v14, %v390_v8  ;;  %v1103_v31 = vpop.f32.mrb[1].mxu1  ;;  %v453_v35 = vadd.f32 %v1045_v33, %v431_v30  ;;  %v1210_v8 = vld [vmem:[%s1573_s2 + $0x10] sm:$0xff]   ;;  %v1214_v33 = vld [vmem:[%s1575_s4 + $0x18] sm:$0xff]  }
  0xef   : > { %v447_v10 = vadd.f32 %v1044_v7, %v392_v9  ;;  %v394_v11 = vpop.f32.mrb[2].mxu0  ;;  %v434_v32 = vpop.f32.mrb[2].mxu1  ;;  %v1211_v9 = vld [vmem:[%s1573_s2 + $0x18] sm:$0xff]   ;;  %v1212_v31 = vld [vmem:[%s1575_s4 + $0x10] sm:$0xff]  }
  0xf0   : > { %v395_v12 = vpop.f32.mrb[3].mxu0  ;;  %v442_v17 = vpack.c.bf16 %v441_v16, %v441_v16  ;;  %v1104_v34 = vpop.f32.mrb[3].mxu1  ;;  %1112 = vmatpush3.msra.mxu1 %v453_v35  ;;  %v1213_v32 = vld [vmem:[%s1575_s4] sm:$0xff]  }
  0xf1   : > { %v448_v13 = vpack.c.bf16 %v447_v10, %v447_v10  ;;  %1124 = vmatprep.subr.bf16.mxu1 %v1289_v6  ;;  %v1054_v10 = vld [vmem:[%s1577_s6] ss:$0 sm:$0xff]  ;;  %v1215_v34 = vld [vmem:[%s1575_s4 + $0x8] sm:$0xff]  }
  0xf3   : > { %v458_v15 = vsel %vm352_vm0, %v448_v13, 0 }
  0xf4   : > { %1106 = vmatpush3.bf16.xpose.msra.mxu0 %v458_v15 }
  0xf5   : > { %1116 = vmatprep.subr.bf16.mxu0 %v1289_v6 }
  0xfb   : > { %1108 = vmatmul.mubr.msk.bf16.vlgmr.msra.gmra.mrb[4].mxu0 %vm352_vm0, %v442_v17 }
  0xfc   : > { %1120 = vmatprep.mubr.msk.bf16.mxu0 %vm1290_vm1, %v1289_v6  ;;  %1117 = vmatpush3.bf16.msra.mxu0 %v1206_v36 }
  0xfd   : > { %1118 = vmatprep.subr.bf16.mxu0 %v1289_v6 }
 0x100   : > { %1119 = vmatpush3.bf16.msra.mxu0 %v1207_v40  ;;  %v1063_v40 = vld [vmem:[%s1576_s5 + $0x7] ss:$0 sm:$0xff] }
 0x101   : > { %1132 = vmatprep.subr.bf16.mxu0 %v1289_v6 }
 0x1ce   : > { %v494_v20 = vpop.f32.mrb[4].mxu0 }
 0x1cf   : > { %v1109_v21 = vpop.f32.mrb[5].mxu0  ;;  %v501_v22 = vsel %vm500_vm2, %v494_v20, -inf }
 0x1d0   : > { %502 = vmax.xlane.f32.xlu0 %v501_v22  ;;  %v497_v23 = vpop.f32.mrb[6].mxu0 }
 0x1d1   : > { %v1110_v24 = vpop.f32.mrb[7].mxu0 }
 0x25d   : > { %v503_v25 = vpop.xlane.xlu0 %502 }
 0x25e   : > { %v504_v26 = vsub.f32 %v494_v20, %v503_v25 }
 0x260   : > { %v505_v27 = vmul.f32 1.442695, %v504_v26 }
 0x262   : > { %1216 = vpow2.f32 %v505_v27 }
 0x26c   : > { %v1217_v28 = vpop.eup %1216 }
 0x26d   : > { %v507_v29 = vsel %vm500_vm2, %v1217_v28, 0.0 }
 0x26e   : > { %508 = vadd.xlane.f32.xlu0 %v507_v29 }
 0x2fb   : > { %v509_v37 = vpop.xlane.xlu0 %508 }
 0x2fc   : > { %1218 = vrcp.f32 %v509_v37 }
 0x306   : > { %v1219_v38 = vpop.eup %1218 }
 0x307   : > { %v511_v39 = vmul.f32 %v1219_v38, %v1217_v28 }
 0x309   : > { %1114 = vmatmul.mubr.msk.f32.vlgmr.msra.gmra.mrb[4].mxu1 %vm500_vm2, %v511_v39  ;;  %v1062_v39 = vld [vmem:[%s1576_s5 + $0x6] ss:$0 sm:$0xff] }
 0x30a   : > { %1128 = vmatprep.mubr.msk.bf16.mxu1 %vm1290_vm1, %v1289_v6  ;;  %1125 = vmatpush3.bf16.msra.mxu1 %v1208_v58 }
 0x30b   : > { %1126 = vmatprep.subr.bf16.mxu1 %v1289_v6 }
 0x30e   : > { %1127 = vmatpush3.bf16.msra.mxu1 %v1209_v59 }
 0x30f   : > { %1140 = vmatprep.subr.bf16.mxu1 %v1289_v6 }
 0x3dc   : > { %v581_v41 = vpop.f32.mrb[4].mxu1 }
 0x3dd   : > { %v585_v42 = vpack.c.bf16 %v581_v41, %v581_v41  ;;  %v1115_v43 = vpop.f32.mrb[5].mxu1 }
 0x3df   : > { %1121 = vmatmul.mubr.msk.bf16.vlgmr.msra.gmra.mrb[8].mxu0 %vm352_vm0, %v585_v42 }
 0x3e0   : > { %1136 = vmatprep.mubr.msk.bf16.mxu0 %vm1290_vm1, %v1289_v6  ;;  %1133 = vmatpush3.bf16.msra.mxu0 %v1210_v8 }
 0x3e1   : > { %1134 = vmatprep.subr.bf16.mxu0 %v1289_v6 }
 0x3e4   : > { %1135 = vmatpush3.bf16.msra.mxu0 %v1211_v9 }
 0x3e5   : > { %1148 = vmatprep.subr.bf16.mxu0 %v1289_v6 }
 0x4b2   : > { %v643_v46 = vpop.f32.mrb[8].mxu0 }
 0x4b3   : > { %v644_v47 = vadd.f32 %v1048_v44, %v643_v46  ;;  %v1122_v48 = vpop.f32.mrb[9].mxu0 }
 0x4b4   : > { %v646_v49 = vpop.f32.mrb[10].mxu0  ;;  %v1070_v48 = vld [vmem:[%s1578_s7] ss:$0 sm:$0xff] }
 0x4b5   : > { %v1123_v50 = vpop.f32.mrb[11].mxu0  ;;  %v650_v51 = vadd.f32 %v649_v45, %v644_v47 }
 0x4b7   : > { %v651_v52 = vsel %vm352_vm0, %v650_v51, 0.0 }
 0x4b8   : > { %652 = vadd.xlane.f32.xlu1 %v651_v52 }
 0x545   : > { %v653_v53 = vpop.xlane.xlu1 %652 }
 0x546   : > { %v655_v54 = vmul.f32 0.03125, %v653_v53 }
 0x548   : > { %v656_v55 = vsub.f32 %v650_v51, %v655_v54 }
 0x54a   : > { %v657_v56 = vmul.f32 %v656_v55, %v656_v55 }
 0x54c   : > { %v658_v57 = vsel %vm352_vm0, %v657_v56, 0.0 }
 0x54d   : > { %659 = vadd.xlane.f32.xlu1 %v658_v57 }
 0x5da   : > { %v660_v60 = vpop.xlane.xlu1 %659 }
 0x5db   : > { %v661_v61 = vmul.f32 0.03125, %v660_v60 }
 0x5dd   : > { %v662_v62 = vadd.f32 1e-05, %v661_v61 }
 0x5df   : > { %1220 = vrsqrt.f32 %v662_v62 }
 0x5e9   : > { %v1221_v63 = vpop.eup %1220 }
 0x5ea   : > { %v664_v1 = vmul.f32 %v1221_v63, %v656_v55 }
 0x5ec   : > { %v669_v3 = vmul.f32 %v1052_v0, %v664_v1 }
 0x5ee   : > { %v674_v4 = vadd.f32 %v1053_v2, %v669_v3 }
 0x5f0   : > { %v675_v7 = vpack.c.bf16 %v674_v4, %v674_v4 }
 0x5f2   : > { %1129 = vmatmul.mubr.msk.bf16.vlgmr.msra.gmra.mrb[8].mxu1 %vm352_vm0, %v675_v7 }
 0x5f3   : > { %1144 = vmatprep.mubr.msk.bf16.mxu1 %vm1290_vm1, %v1289_v6  ;;  %1141 = vmatpush3.bf16.msra.mxu1 %v1212_v31 }
 0x5f4   : > { %1142 = vmatprep.subr.bf16.mxu1 %v1289_v6 }
 0x5f7   : > { %1143 = vmatpush3.bf16.msra.mxu1 %v1214_v33 }
 0x5fa   : > { %1145 = vmatmul.mubr.msk.bf16.vlgmr.msra.gmra.mrb[12].mxu1 %vm352_vm0, %v1402_v5 }
 0x6c5   : > { %v736_v11 = vpop.f32.mrb[8].mxu1 }
 0x6c6   : > { %v737_v12 = vadd.f32 %v1054_v10, %v736_v11  ;;  %v1130_v13 = vpop.f32.mrb[9].mxu1 }
 0x6c7   : > { %v739_v14 = vpop.f32.mrb[10].mxu1 }
 0x6c8   : > { %v742_v15 = vmax.f32 %v737_v12, 0.0  ;;  %v1131_v16 = vpop.f32.mrb[11].mxu1 }
 0x6ca   : > { %v743_v17 = vpack.c.bf16 %v742_v15, %v742_v15 }
 0x6cc   : > { %1137 = vmatmul.mubr.msk.bf16.vlgmr.msra.gmra.mrb[12].mxu0 %vm352_vm0, %v743_v17 }
 0x6cd   : > { %1152 = vmatprep.mubr.msk.bf16.mxu0 %vm1290_vm1, %v1289_v6  ;;  %1149 = vmatpush3.bf16.msra.mxu0 %v1213_v32  ;;  %v886_v5 = vpop.f32.mrb[12].mxu1 }
 0x6ce   : > { %1150 = vmatprep.subr.bf16.mxu0 %v1289_v6  ;;  %v1146_v44 = vpop.f32.mrb[13].mxu1 }
 0x6cf   : > { %v889_v45 = vpop.f32.mrb[14].mxu1 }
 0x6d0   : > { %v1147_v46 = vpop.f32.mrb[15].mxu1 }
 0x6d1   : > { %1151 = vmatpush3.bf16.msra.mxu0 %v1215_v34 }
 0x79f   : > { %v801_v19 = vpop.f32.mrb[12].mxu0 }
 0x7a0   : > { %v802_v20 = vadd.f32 %v1058_v18, %v801_v19  ;;  %v1138_v21 = vpop.f32.mrb[13].mxu0 }
 0x7a1   : > { %v804_v22 = vpop.f32.mrb[14].mxu0 }
 0x7a2   : > { %v1139_v23 = vpop.f32.mrb[15].mxu0  ;;  %v807_v24 = vadd.f32 %v802_v20, %v674_v4 }
 0x7a4   : > { %v808_v25 = vsel %vm352_vm0, %v807_v24, 0.0 }
 0x7a5   : > { %809 = vadd.xlane.f32.xlu0 %v808_v25 }
 0x832   : > { %v810_v26 = vpop.xlane.xlu0 %809 }
 0x833   : > { %v811_v27 = vmul.f32 0.03125, %v810_v26 }
 0x835   : > { %v812_v28 = vsub.f32 %v807_v24, %v811_v27 }
 0x837   : > { %v813_v29 = vmul.f32 %v812_v28, %v812_v28 }
 0x839   : > { %v814_v30 = vsel %vm352_vm0, %v813_v29, 0.0 }
 0x83a   : > { %815 = vadd.xlane.f32.xlu1 %v814_v30 }
 0x8c7   : > { %v816_v35 = vpop.xlane.xlu1 %815 }
 0x8c8   : > { %v817_v36 = vmul.f32 0.03125, %v816_v35 }
 0x8ca   : > { %v818_v37 = vadd.f32 1e-05, %v817_v36 }
 0x8cc   : > { %1222 = vrsqrt.f32 %v818_v37 }
 0x8d6   : > { %v1223_v38 = vpop.eup %1222 }
 0x8d7   : > { %v820_v6 = vmul.f32 %v1223_v38, %v812_v28 }
 0x8d9   : > { %v825_v41 = vmul.f32 %v1062_v39, %v820_v6 }
 0x8db   : > { %v830_v42 = vadd.f32 %v1063_v40, %v825_v41 }
 0x8dd   : > { %v831_v43 = vpack.c.bf16 %v830_v42, %v830_v42 }
 0x8df   : > { %1153 = vmatmul.mubr.msk.bf16.vlgmr.msra.gmra.mrb[16].mxu0 %vm352_vm0, %v831_v43 }
 0x9b2   : > { %v941_v47 = vpop.f32.mrb[16].mxu0 }
 0x9b3   : > { %v942_v49 = vadd.f32 %v941_v47, %v886_v5  ;;  %v1154_v50 = vpop.f32.mrb[17].mxu0 }
 0x9b4   : > { %v944_v51 = vpop.f32.mrb[18].mxu0 }
 0x9b5   : > { %v954_v52 = vadd.f32 %v1070_v48, %v942_v49  ;;  %v1155_v53 = vpop.f32.mrb[19].mxu0 }
 0x9b7   : > { %955 = vst.msk [vmem:[%s296_s10] sm:$0xff] %vm352_vm0, %v954_v52 }
 0x9b8   : > { %1237 = shalt.err (!%p1234_p3)
}
 0x9b9   : > { %s1238_s22 = scalar_lea.hbm %s1528_s18, 128  ;;  %s1242_s26 = scalar_lea.hbm %s1579_s8, 256 }
 0x9ba   : > { %p1239_p4 = scmp.ne.s32.totalorder %s1528_s18, %s1238_s22  ;;  %p1243_p9 = scmp.lt.u32.totalorder %s1528_s18, %s1579_s8 }
 0x9bb   : > { %p1244_p10 = scmp.lt.u32.totalorder %s1242_s26, %s1238_s22  ;;  %p1246_p12 = scmp.lt.u32.totalorder %s1238_s22, %s1528_s18 }
 0x9bc   : > { %p1240_p7 = pnand %p1239_p4, %p1375_p5 }
 0x9bd   : > { %p1245_p11 = por %p1244_p10, %p1243_p9 }
 0x9be   : > { %p1241_p8 = pneg %p1240_p7 }
 0x9bf   : > { %p1247_p13 = por %p1246_p12, %p1245_p11 }
 0x9c1   : > { %p1248_p0 = pnand %p1247_p13, %p1241_p8 }
 0x9c3   : > { %1251 = shalt.err (!%p1248_p0)
}
 0x9c4   : > { %1156 = dma.vmem_to_hbm [thread:$0]  (%p1375_p5), %s1530_s12, 128, %s1528_s18, %s957_s9  }
 0x9c5 PF: > { %p1162_p1 = scmp.ge.s32.totalorder %s1286_s30, 2  ;;  %s982_s17 = sand.u32 1, %s1274_s27  }
 0x9c6   : > { %s983_s19 = scalar_lea.sflag [#allocation3], %s982_s17 }
 0x9c7   : > { %p1159_p2 = pnand %p1162_p1, %p1379_p6 }
 0x9c9   : > { %1269 = dma.done.wait (!%p1159_p2), %s983_s19, 128  }
 0x9ca   : > { %1271 = vsyncadd (!%p1159_p2), %s983_s19, 4294967168  ;;  %p18_p3 = scmp.ge.s32.totalorder %s1362_s11, 4   ;;  %s1582_s27 = smov %s1278_s28 }
 0x9cb   : > { %s1583_s28 = smov %s1282_s29  ;;  %s1584_s29 = smov %s1373_s14 }
 0x9cc   : > { %s1585_s30 = smov %s1362_s11  ;;  %20 = sbr.rel (!%p18_p3) target bundleno = 3 (0x3), region = 87 }
 0x9d3   :  { %988 = vsyncpa [#allocation3], 1 }
 0x9d4   :  { %990 = vsyncpa [#allocation3 + $0x1], 1 }

</bundles_post_ra>
